<compile_context>
chip_gen: v7x
topology: tpu7x:2x2x1
jax: 0.10.0
libtpu: 0.0.40
codegen_flags: <defaults>
</compile_context>

<pallas_src>
import jax
import jax.numpy as jnp
from jax.experimental import pallas as pl
from jax.experimental.pallas import tpu as pltpu


def _st_attn_kernel(x_ref, w_ref, b_ref, ctx_ref, wts_ref):
    """One grid step == one block of BB batch rows.

    x_ref   : (BB, T, D) VMEM, input dtype
    w_ref   : (1, D)     VMEM, f32 (lane-dense Linear weight row)
    b_ref   : (1,)       SMEM, f32 (Linear bias scalar)
    ctx_ref : (BB, D)    VMEM out, input dtype
    wts_ref : (BB, T)    VMEM out, input dtype
    """
    w = w_ref[...]                                   # (1, D) f32
    bias = b_ref[0]                                  # scalar (SMEM read)

    # attn scores: Linear(D -> 1) as a lane (D) reduction. keepdims keeps T on
    # the sublane axis (matching x's layout) so no lanes<->sublanes relayout is
    # needed before the ctx multiply. bf16 x * f32 w upcasts per-vreg; no
    # block-sized f32 copy of x is materialized.
    scores = jnp.sum(x_ref[...] * w[None, :, :], axis=-1, keepdims=True) + bias  # (BB,T,1) f32

    # softmax over the time axis (PyTorch dim=1).
    m = jnp.max(scores, axis=1, keepdims=True)       # (BB, 1, 1)
    e = jnp.exp(scores - m)                          # (BB, T, 1)
    s = jnp.sum(e, axis=1, keepdims=True)            # (BB, 1, 1)
    wts = e / s                                      # exact; only BB values in s

    # context = sum_t wts[t] * x[t]; wts broadcasts along the lane (D) axis.
    ctx = jnp.sum(wts * x_ref[...], axis=1)          # (BB, D) f32

    ctx_ref[...] = ctx.astype(ctx_ref.dtype)
    # single sublanes->lanes relayout, only for the small lane-dense output.
    wts_ref[...] = wts[:, :, 0].astype(wts_ref.dtype)


def _vmem_capacity_bytes():
    try:
        return int(getattr(pltpu.get_tpu_info(), "vmem_capacity_bytes", 64 << 20))
    except Exception:
        return 64 << 20


def _choose_batch_block(B, T, D, itemsize, target_bytes):
    """Pick rows-per-grid-step so the x tile is ~target_bytes."""
    row_bytes = max(1, T * D * itemsize)
    bb = target_bytes // row_bytes
    if bb >= B:
        # Whole batch would fit one tile: still split so there are >=4 grid
        # steps when possible (>=2 per v7x TensorCore under "parallel"
        # semantics, enabling per-core DMA/compute overlap).
        if B >= 32:
            bb = max(8, (((B + 3) // 4) // 8) * 8)
        elif B >= 16:
            bb = 8
        else:
            return B                      # tiny batch: one full-dim block
    else:
        # bb is the second-minor dim of the 2-D output blocks -> multiple of 8.
        bb = max(8, (bb // 8) * 8)
    bb = int(min(bb, B))
    # Prefer an even number of grid steps (balanced across two v7x cores).
    if 8 < bb < B:
        g = -(-B // bb)
        if g % 2 == 1 and (-(-B // (bb - 8))) % 2 == 0:
            bb -= 8
    return bb


def spatiotemporal_attention(x, weight, bias, *, target_block_bytes=None):
    """x: (B, T, D); weight: (1, D) (PyTorch Linear weight); bias: (1,).

    Returns (context (B, D), attn_weights (B, T, 1)) in x.dtype,
    matching the PyTorch module.
    """
    B, T, D = x.shape
    dtype = x.dtype
    itemsize = jnp.dtype(dtype).itemsize

    vmem_cap = _vmem_capacity_bytes()
    if target_block_bytes is None:
        # ~1/16 of physical VMEM per x tile: 8 MiB on 128 MiB parts (v5e/v6e),
        # 4 MiB on 64 MiB parts (v7x); leaves room for double buffering,
        # possible f32 product temps and outputs.
        target_block_bytes = max(1 << 20, min(8 << 20, vmem_cap // 16))

    w_row = jnp.asarray(weight, jnp.float32).reshape(1, D)   # lane-dense row
    b1 = jnp.asarray(bias, jnp.float32).reshape(1)

    bb = _choose_batch_block(B, T, D, itemsize, target_block_bytes)
    grid_b = pl.cdiv(B, bb)   # partial last block allowed; no host-side pad

    # VMEM budget: double-buffered x tiles + headroom for (possibly un-fused)
    # block-sized f32 products + double-buffered outputs.
    x_tile = bb * T * D * itemsize
    f32_tmp = bb * T * D * 4
    out_tile = bb * (D + T) * itemsize
    est = 2 * x_tile + 2 * f32_tmp + 2 * out_tile + (2 << 20)
    vmem_limit = int(min(max(est, 32 << 20), max(32 << 20, vmem_cap - (16 << 20))))

    ctx, wts = pl.pallas_call(
        _st_attn_kernel,
        out_shape=(
            jax.ShapeDtypeStruct((B, D), dtype),
            jax.ShapeDtypeStruct((B, T), dtype),
        ),
        grid_spec=pltpu.PrefetchScalarGridSpec(
            num_scalar_prefetch=0,
            grid=(grid_b,),
            in_specs=[
                pl.BlockSpec((bb, T, D), lambda b: (b, 0, 0)),        # x block
                pl.BlockSpec((1, D), lambda b: (0, 0)),               # weight
                pl.BlockSpec(memory_space=pltpu.MemorySpace.SMEM),    # bias
            ],
            out_specs=[
                pl.BlockSpec((bb, D), lambda b: (b, 0)),   # context (lane-dense)
                pl.BlockSpec((bb, T), lambda b: (b, 0)),   # weights (lane-dense)
            ],
        ),
        compiler_params=pltpu.CompilerParams(
            dimension_semantics=("parallel",),
            vmem_limit_bytes=vmem_limit,
        ),
    )(x, w_row, b1)

    return ctx, wts.reshape(B, T, 1)


def _reference(x, weight, bias):
    # Pure-JAX reference mirroring the PyTorch forward (f32 compute).
    xf = x.astype(jnp.float32)
    scores = jnp.einsum("btd,od->bto", xf, weight.astype(jnp.float32))
    scores = scores + bias.astype(jnp.float32)
    w = jax.nn.softmax(scores, axis=1)
    ctx = jnp.sum(w * xf, axis=1)
    return ctx, w


if __name__ == "__main__":
    key = jax.random.PRNGKey(0)
    kx, kw, kb, kx2, kw2, kb2 = jax.random.split(key, 6)

    # ---- small shape: single full-batch block (grid = 1) ----------------
    B, T, D = 2, 8, 32
    x = jax.random.normal(kx, (B, T, D), dtype=jnp.float32)
    weight = jax.random.normal(kw, (1, D), dtype=jnp.float32) * 0.1
    bias = jax.random.normal(kb, (1,), dtype=jnp.float32) * 0.1

    context, attn_weights = spatiotemporal_attention(x, weight, bias)
    jax.block_until_ready((context, attn_weights))

    ref_ctx, ref_w = _reference(x, weight, bias)
    assert context.shape == (B, D) and context.dtype == x.dtype
    assert attn_weights.shape == (B, T, 1) and attn_weights.dtype == x.dtype
    assert jnp.allclose(context, ref_ctx, atol=1e-4, rtol=1e-4)
    assert jnp.allclose(attn_weights, ref_w, atol=1e-4, rtol=1e-4)

    # ---- larger shape: multi-block grid with a partial last block -------
    # (B2 % bb != 0 -> last block is partial; no host-side padding of x)
    B2, T2, D2 = 20, 16, 128
    x2 = jax.random.normal(kx2, (B2, T2, D2), dtype=jnp.float32)
    weight2 = jax.random.normal(kw2, (1, D2), dtype=jnp.float32) * 0.1
    bias2 = jax.random.normal(kb2, (1,), dtype=jnp.float32) * 0.1
    ctx2, w2 = spatiotemporal_attention(x2, weight2, bias2,
                                        target_block_bytes=64 * 1024)
    jax.block_until_ready((ctx2, w2))
    ref_ctx2, ref_w2 = _reference(x2, weight2, bias2)
    assert ctx2.shape == (B2, D2) and w2.shape == (B2, T2, 1)
    assert jnp.allclose(ctx2, ref_ctx2, atol=1e-4, rtol=1e-4)
    assert jnp.allclose(w2, ref_w2, atol=1e-4, rtol=1e-4)

    # ---- bf16 input: dtype preserved, f32 compute inside the kernel -----
    xb = x.astype(jnp.bfloat16)
    ctxb, wb = spatiotemporal_attention(xb, weight, bias)
    jax.block_until_ready((ctxb, wb))
    ref_ctxb, ref_wb = _reference(xb, weight, bias)
    assert ctxb.dtype == jnp.bfloat16 and wb.dtype == jnp.bfloat16
    assert jnp.allclose(ctxb.astype(jnp.float32), ref_ctxb, atol=2e-2, rtol=2e-2)
    assert jnp.allclose(wb.astype(jnp.float32), ref_wb, atol=2e-2, rtol=2e-2)

    print("KERNEL_OK")
</pallas_src>

<mosaic_0001>
module attributes {stable_mosaic.version = 11 : i64} {
  func.func @_st_attn_kernel(%arg0: i32, %arg1: memref<2x8x32xf32, #tpu.memory_space<vmem>>, %arg2: memref<1x32xf32, #tpu.memory_space<vmem>>, %arg3: memref<1xf32, #tpu.memory_space<smem>>, %arg4: memref<2x32xf32, #tpu.memory_space<vmem>>, %arg5: memref<2x8xf32, #tpu.memory_space<vmem>>) attributes {dimension_semantics = [#tpu.dimension_semantics<parallel>], iteration_bounds = array<i64: 1>, scalar_prefetch = 0 : i64, scratch_operands = 0 : i64, tpu.core_type = #tpu.core_type<tc>, window_params = [{transform_indices = @transform_0, window_bounds = array<i64: 2, 8, 32>}, {pipeline_mode = #tpu.pipeline_mode<synchronous>, transform_indices = @transform_1, window_bounds = array<i64: 1, 32>}, {transform_indices = @transform_2, window_bounds = array<i64: 1>}, {transform_indices = @transform_3, window_bounds = array<i64: 2, 32>}, {transform_indices = @transform_4, window_bounds = array<i64: 2, 8>}]} {
    %c0 = arith.constant 0 : index
    %c0_0 = arith.constant 0 : index
    %0 = vector.load %arg2[%c0, %c0_0] : memref<1x32xf32, #tpu.memory_space<vmem>>, vector<1x32xf32>
    %c0_1 = arith.constant 0 : index
    %1 = memref.load %arg3[%c0_1] : memref<1xf32, #tpu.memory_space<smem>>
    %c0_2 = arith.constant 0 : index
    %c0_3 = arith.constant 0 : index
    %c0_4 = arith.constant 0 : index
    %2 = vector.load %arg1[%c0_2, %c0_3, %c0_4] : memref<2x8x32xf32, #tpu.memory_space<vmem>>, vector<2x8x32xf32>
    %3 = vector.shape_cast %0 : vector<1x32xf32> to vector<1x1x32xf32>
    %4 = vector.broadcast %3 : vector<1x1x32xf32> to vector<2x8x32xf32>
    %5 = arith.mulf %2, %4 : vector<2x8x32xf32>
    %cst = arith.constant dense<0.000000e+00> : vector<2x8xf32>
    %6 = vector.multi_reduction <add>, %5, %cst [2] : vector<2x8x32xf32> to vector<2x8xf32>
    %7 = vector.shape_cast %6 : vector<2x8xf32> to vector<2x8x1xf32>
    %8 = vector.broadcast %1 : f32 to vector<2x8x1xf32>
    %9 = arith.addf %7, %8 : vector<2x8x1xf32>
    %cst_5 = arith.constant dense<0xFF800000> : vector<2x1xf32>
    %10 = vector.multi_reduction <maximumf>, %9, %cst_5 [1] : vector<2x8x1xf32> to vector<2x1xf32>
    %11 = vector.shape_cast %10 : vector<2x1xf32> to vector<2x1x1xf32>
    %12 = vector.broadcast %11 : vector<2x1x1xf32> to vector<2x8x1xf32>
    %13 = arith.subf %9, %12 : vector<2x8x1xf32>
    %14 = math.exp %13 : vector<2x8x1xf32>
    %cst_6 = arith.constant dense<0.000000e+00> : vector<2x1xf32>
    %15 = vector.multi_reduction <add>, %14, %cst_6 [1] : vector<2x8x1xf32> to vector<2x1xf32>
    %16 = vector.shape_cast %15 : vector<2x1xf32> to vector<2x1x1xf32>
    %17 = vector.broadcast %16 : vector<2x1x1xf32> to vector<2x8x1xf32>
    %18 = arith.divf %14, %17 : vector<2x8x1xf32>
    %c0_7 = arith.constant 0 : index
    %c0_8 = arith.constant 0 : index
    %c0_9 = arith.constant 0 : index
    %19 = vector.load %arg1[%c0_7, %c0_8, %c0_9] : memref<2x8x32xf32, #tpu.memory_space<vmem>>, vector<2x8x32xf32>
    %20 = vector.broadcast %18 : vector<2x8x1xf32> to vector<2x8x32xf32>
    %21 = arith.mulf %20, %19 : vector<2x8x32xf32>
    %cst_10 = arith.constant dense<0.000000e+00> : vector<2x32xf32>
    %22 = vector.multi_reduction <add>, %21, %cst_10 [1] : vector<2x8x32xf32> to vector<2x32xf32>
    %c0_11 = arith.constant 0 : index
    %c0_12 = arith.constant 0 : index
    %23 = vector.load %arg4[%c0_11, %c0_12] : memref<2x32xf32, #tpu.memory_space<vmem>>, vector<2x32xf32>
    tpu.vector_store %arg4[%c0_11, %c0_12], %22 {strides = array<i32>} : memref<2x32xf32, #tpu.memory_space<vmem>>, vector<2x32xf32>,
    %24 = vector.shape_cast %18 : vector<2x8x1xf32> to vector<2x8xf32>
    %c0_13 = arith.constant 0 : index
    %c0_14 = arith.constant 0 : index
    %25 = vector.load %arg5[%c0_13, %c0_14] : memref<2x8xf32, #tpu.memory_space<vmem>>, vector<2x8xf32>
    tpu.vector_store %arg5[%c0_13, %c0_14], %24 {strides = array<i32>} : memref<2x8xf32, #tpu.memory_space<vmem>>, vector<2x8xf32>,
    return
  }
  func.func @transform_0(%arg0: i32) -> (i32, i32, i32) {
    %c0_i32 = arith.constant 0 : i32
    %c0_i32_0 = arith.constant 0 : i32
    %c0_i32_1 = arith.constant 0 : i32
    return %arg0, %c0_i32, %c0_i32_0 : i32, i32, i32
  }
  func.func @transform_1(%arg0: i32) -> (i32, i32) {
    %c0_i32 = arith.constant 0 : i32
    %c0_i32_0 = arith.constant 0 : i32
    %c0_i32_1 = arith.constant 0 : i32
    return %c0_i32, %c0_i32_0 : i32, i32
  }
  func.func @transform_2(%arg0: i32) -> i32 {
    %c0_i32 = arith.constant 0 : i32
    %c0_i32_0 = arith.constant 0 : i32
    return %c0_i32 : i32
  }
  func.func @transform_3(%arg0: i32) -> (i32, i32) {
    %c0_i32 = arith.constant 0 : i32
    %c0_i32_0 = arith.constant 0 : i32
    return %arg0, %c0_i32 : i32, i32
  }
  func.func @transform_4(%arg0: i32) -> (i32, i32) {
    %c0_i32 = arith.constant 0 : i32
    %c0_i32_0 = arith.constant 0 : i32
    return %arg0, %c0_i32 : i32, i32
  }
}

</mosaic_0001>

<bundles_post_ra>
// kernel: tpu_custom_call.1
= control target key start
LH: loop header
LB: loop body
LE: loop exit
PB: predicated region body
PF: predicated region fallthrough
CT: control target
= control target key end

     0   :  { %11 = vsyncpa [#allocation4], 0  ;;  %s321_s0 = inlined_call_operand.hbm [shape: f32[2,8,32], index: 0, kind: input, shape index: {}]   ;;  %s322_s1 = inlined_call_operand.vmem [shape: f32[1,32], index: 1, kind: input, shape index: {}]   ;;  %s323_s2 = inlined_call_operand.<no memory space> [shape: f32[1], index: 2, kind: input, shape index: {}]   ;;  %s324_s3 = inlined_call_operand.hbm [shape: f32[2,32], index: 3, kind: output, shape index: {0}]   ;;  %s325_s4 = inlined_call_operand.hbm [shape: f32[2,8], index: 4, kind: output, shape index: {1}]  }
   0x1   :  { %12 = vsyncpa [#allocation5], 0 }
   0x2   :  { %13 = vsyncpa [#allocation8], 0  ;;  %s243_s15 = smov [#allocation3]   ;;  %s171_s19 = scalar_lea.hbm %s321_s0, 256 }
   0x3   :  { %s19_s16 = sshll.u32 %s243_s15, 4  ;;  %p172_p0 = scmp.ne.s32.totalorder %s321_s0, %s171_s19  ;;  %s20_s16 = int_to_ptr.vmem [resolvable:$true] %s19_s16 }
   0x4   :  { %p175_p1 = scmp.lt.u32.totalorder %s171_s19, %s321_s0 }
   0x6   :  { %p177_p2 = pnand %p175_p1, %p172_p0 }
   0x8   :  { %180 = shalt.err (!%p177_p2)
}
   0x9   :  { %s181_s24 = scalar_lea.vmem %s20_s16, 256  ;;  %p186_p4 = scmp.lt.s32.totalorder %s20_s16, %s20_s16 }
   0xa   :  { %p182_p3 = scmp.ne.s32.totalorder %s20_s16, %s181_s24  ;;  %p187_p5 = scmp.lt.s32.totalorder %s181_s24, %s181_s24 }
   0xc   :  { %p188_p6 = por %p187_p5, %p186_p4 }
   0xe   :  { %p189_p7 = pnand %p188_p6, %p182_p3 }
  0x10   :  { %192 = shalt.err (!%p189_p7)
}
  0x11   :  { %s244_s25 = smov 128   ;;  %s245_s26 = smov 8  }
  0x12   :  { %25 = dma.hbm_to_vmem [thread:$0]  %s321_s0, 256, %s20_s16, [#allocation4], %s244_s25, %s244_s25, %s245_s26  }
  0x13   :  { %237 = dma.done.wait [#allocation4], 256  }
  0x14   :  { %238 = vsyncadd [#allocation4], 4294967040  ;;  %v157_v0 = vld [vmem:[%s322_s1] ss:$0 sm:$0xff]  ;;  %vm45_vm0 = vcmask 261120   ;;  %v36_v2 = vld [vmem:[#allocation3 + $0x8] sm:$0xff]  ;;  %v52_v7 = vstv %s323_s2  ;;  %v114_v42 = vlaneseq }
  0x15   :  { %v35_v1 = vld [vmem:[#allocation3] sm:$0xff]  ;;  %v44_v4 = vmul.f32 %v157_v0, %v36_v2  ;;  %s246_s0 = smov [#allocation7]   ;;  %vm107_vm1 = vcmask 1041409   ;;  %vm126_vm2 = vcmask 58368  }
  0x16   :  { %v43_v3 = vmul.f32 %v157_v0, %v35_v1  ;;  %v115_v43 = vand.u32 127, %v114_v42  ;;  %v117_v44 = vshrl.u32 %v114_v42, 7  ;;  %s144_s1 = sshll.u32 %s246_s0, 4  ;;  %s145_s1 = int_to_ptr.vmem [resolvable:$true] %s144_s1 }
  0x17   :  { %v49_v6 = vsel %vm45_vm0, %v44_v4, 0.0  ;;  %s193_s2 = scalar_lea.vmem %s145_s1, 32  ;;  %p198_p9 = scmp.lt.s32.totalorder %s145_s1, %s145_s1 }
  0x18   :  { %v46_v5 = vsel %vm45_vm0, %v43_v3, 0.0  ;;  %v118_v48 = vsub.s32 %v115_v43, %v117_v44  ;;  %p194_p8 = scmp.ne.s32.totalorder %s145_s1, %s193_s2  ;;  %p199_p10 = scmp.lt.s32.totalorder %s193_s2, %s193_s2 }
  0x19   :  { %47 = vadd.xlane.f32.xlu0 %v46_v5 }
  0x1a   :  { %p200_p11 = por %p199_p10, %p198_p9 }
  0x1c   :  { %p201_p12 = pnand %p200_p11, %p194_p8 }
  0x1d   :  { %50 = vadd.xlane.f32.xlu0 %v49_v6 }
  0xa6   :  { %v48_v8 = vpop.xlane.xlu0 %47 }
  0xa7   :  { %v53_v9 = vadd.f32 %v52_v7, %v48_v8 }
  0xa9   :  { %v55_v10 = vrot.slane %v53_v9, 4 }
  0xaa   :  { %v51_v11 = vpop.xlane.xlu0 %50 }
  0xab   :  { %v56_v12 = vmax.f32 %v53_v9, %v55_v10  ;;  %v54_v13 = vadd.f32 %v52_v7, %v51_v11 }
  0xad   :  { %v57_v14 = vrot.slane %v56_v12, 2  ;;  %v61_v15 = vrot.slane %v54_v13, 4 }
  0xaf   :  { %v58_v16 = vmax.f32 %v56_v12, %v57_v14  ;;  %v62_v17 = vmax.f32 %v54_v13, %v61_v15 }
  0xb1   :  { %v59_v18 = vrot.slane %v58_v16, 1  ;;  %v63_v19 = vrot.slane %v62_v17, 2 }
  0xb3   :  { %v60_v20 = vmax.f32 %v58_v16, %v59_v18  ;;  %v64_v21 = vmax.f32 %v62_v17, %v63_v19 }
  0xb5   :  { %v67_v22 = vsub.f32 %v53_v9, %v60_v20  ;;  %v65_v23 = vrot.slane %v64_v21, 1 }
  0xb7   :  { %v69_v24 = vmul.f32 1.442695, %v67_v22  ;;  %v66_v25 = vmax.f32 %v64_v21, %v65_v23 }
  0xb9   :  { %163 = vpow2.f32 %v69_v24  ;;  %v68_v26 = vsub.f32 %v54_v13, %v66_v25 }
  0xbb   :  { %v71_v27 = vmul.f32 1.442695, %v68_v26 }
  0xbd   :  { %165 = vpow2.f32 %v71_v27 }
  0xc3   :  { %v164_v28 = vpop.eup %163 }
  0xc4   :  { %v73_v29 = vrot.slane %v164_v28, 4 }
  0xc6   :  { %v74_v30 = vadd.f32 %v164_v28, %v73_v29 }
  0xc7   :  { %v166_v31 = vpop.eup %165 }
  0xc8   :  { %v75_v32 = vrot.slane %v74_v30, 2  ;;  %v79_v33 = vrot.slane %v166_v31, 4 }
  0xca   :  { %v80_v34 = vadd.f32 %v166_v31, %v79_v33  ;;  %v76_v35 = vadd.f32 %v75_v32, %v74_v30 }
  0xcc   :  { %v81_v36 = vrot.slane %v80_v34, 2  ;;  %v77_v37 = vrot.slane %v76_v35, 1 }
  0xce   :  { %v78_v38 = vadd.f32 %v77_v37, %v76_v35  ;;  %v82_v39 = vadd.f32 %v81_v36, %v80_v34 }
  0xd0   :  { %v83_v40 = vrot.slane %v82_v39, 1  ;;  %167 = vrcp.f32 %v78_v38 }
  0xd2   :  { %v84_v41 = vadd.f32 %v83_v40, %v82_v39 }
  0xd4   :  { %169 = vrcp.f32 %v84_v41 }
  0xda   :  { %v168_v45 = vpop.eup %167 }
  0xdb   :  { %v86_v46 = vmul.f32 %v168_v45, %v164_v28 }
  0xdd   :  { %v89_v47 = vmul.f32 %v86_v46, %v35_v1  ;;  %v119_v54 = vrot.slane %v86_v46, %v118_v48 }
  0xde   :  { %v170_v49 = vpop.eup %169 }
  0xdf   :  { %v88_v50 = vmul.f32 %v170_v49, %v166_v31  ;;  %v91_v51 = vsel %vm45_vm0, %v89_v47, 0.0 }
  0xe0   :  { %v92_v52 = vrot.slane %v91_v51, 4 }
  0xe1   :  { %v90_v53 = vmul.f32 %v88_v50, %v36_v2  ;;  %v123_v55 = vrot.slane %v88_v50, %v118_v48 }
  0xe2   :  { %v93_v56 = vadd.f32 %v92_v52, %v91_v51 }
  0xe3   :  { %v98_v57 = vsel %vm45_vm0, %v90_v53, 0.0  ;;  %v124_v58 = vsel %vm107_vm1, %v123_v55, %v119_v54 }
  0xe4   :  { %v94_v59 = vrot.slane %v93_v56, 2  ;;  %v99_v60 = vrot.slane %v98_v57, 4  ;;  %127 = vst.msk [vmem:[#allocation7] sm:$0x3] %vm126_vm2, %v124_v58 }
  0xe5   :  { %204 = shalt.err (!%p201_p12)
}
  0xe6   :  { %s205_s9 = scalar_lea.hbm %s325_s4, 32 }
  0xe7   :  { %p206_p13 = scmp.ne.s32.totalorder %s325_s4, %s205_s9  ;;  %p209_p0 = scmp.lt.u32.totalorder %s205_s9, %s325_s4 }
  0xe9   :  { %p211_p1 = pnand %p209_p0, %p206_p13 }
  0xeb   :  { %214 = shalt.err (!%p211_p1)
}
  0xec   :  { %147 = dma.vmem_to_hbm [thread:$0]  %s145_s1, 32, %s325_s4, [#allocation8]   ;;  %v95_v61 = vadd.f32 %v94_v59, %v93_v56  ;;  %v100_v62 = vadd.f32 %v99_v60, %v98_v57  ;;  %vm110_vm3 = vcmask 254976  }
  0xed   :  { %s247_s16 = smov [#allocation6]  }
  0xee   :  { %v101_v63 = vrot.slane %v100_v62, 2  ;;  %v96_v0 = vrot.slane %v95_v61, 1  ;;  %s134_s17 = sshll.u32 %s247_s16, 4  ;;  %s135_s17 = int_to_ptr.vmem [resolvable:$true] %s134_s17 }
  0xef   :  { %s215_s18 = scalar_lea.vmem %s135_s17, 32  ;;  %p220_p3 = scmp.lt.s32.totalorder %s135_s17, %s135_s17 }
  0xf0   :  { %v102_v1 = vadd.f32 %v101_v63, %v100_v62  ;;  %v97_v3 = vadd.f32 %v96_v0, %v95_v61  ;;  %p216_p2 = scmp.ne.s32.totalorder %s135_s17, %s215_s18  ;;  %p221_p4 = scmp.lt.s32.totalorder %s215_s18, %s215_s18 }
  0xf2   :  { %v103_v2 = vrot.slane %v102_v1, 1  ;;  %p222_p5 = por %p221_p4, %p220_p3 }
  0xf4   :  { %v104_v4 = vadd.f32 %v103_v2, %v102_v1  ;;  %p223_p6 = pnand %p222_p5, %p216_p2 }
  0xf6   :  { %v108_v5 = vsel %vm107_vm1, %v104_v4, %v97_v3 }
  0xf7   :  { %111 = vst.msk [vmem:[#allocation6] sm:$0x3] %vm110_vm3, %v108_v5 }
  0xf8   :  { %226 = shalt.err (!%p223_p6)
}
  0xf9   :  { %s227_s20 = scalar_lea.hbm %s324_s3, 32 }
  0xfa   :  { %p228_p7 = scmp.ne.s32.totalorder %s324_s3, %s227_s20  ;;  %p231_p8 = scmp.lt.u32.totalorder %s227_s20, %s324_s3 }
  0xfc   :  { %p233_p9 = pnand %p231_p8, %p228_p7 }
  0xfe   :  { %236 = shalt.err (!%p233_p9)
}
  0xff   :  { %137 = dma.vmem_to_hbm [thread:$0]  %s135_s17, 32, %s324_s3, [#allocation5]  }
 0x100   :  { %239 = dma.done.wait [#allocation5], 32  }
 0x101   :  { %240 = vsyncadd [#allocation5], 4294967264 }
 0x102   :  { %241 = dma.done.wait [#allocation8], 32  }
 0x103   :  { %242 = vsyncadd [#allocation8], 4294967264 }
 0x104   :  { %154 = vsyncpa [#allocation4], 1 }
 0x105   :  { %155 = vsyncpa [#allocation5], 1 }
 0x106   :  { %156 = vsyncpa [#allocation8], 1 }

</bundles_post_ra>
